<compile_context>
chip_gen: v5e
topology: v5e:2x2
jax: 0.10.0
libtpu: 0.0.40
codegen_flags: <defaults>
</compile_context>

<pallas_src>
import math

import jax
import jax.numpy as jnp
from jax.experimental import pallas as pl
from jax.experimental.pallas import tpu as pltpu


def _round_up(x, m):
    return (x + m - 1) // m * m


def _ranges_mask(lane, ranges):
    """OR of static [a, b) lane-index ranges."""
    a0, b0 = ranges[0]
    m = (lane >= a0) & (lane < b0)
    for a, b in ranges[1:]:
        m = m | ((lane >= a) & (lane < b))
    return m


# --------------------------------------------------------------------------
# Fused Pallas kernel: LSTM cell + (output_gen ++ param_gen) Linear + head
# activations, writing one lane-dense output slab.
# --------------------------------------------------------------------------
def make_control_params_kernel(n_in, n_rd, H, sig_ranges, sp_ranges):
    def kernel(in_ref, rd_ref, h_ref, c_ref,
               w_g_ref, b_g_ref, w_op_ref, b_op_ref,
               slab_ref, z_scratch):
        # ---- assemble fused LSTM operand [inputs | read_data | h_prev] ------
        z_scratch[:, 0:n_in] = in_ref[...]
        z_scratch[:, n_in:n_in + n_rd] = rd_ref[...]
        z_scratch[:, n_in + n_rd:] = h_ref[...]
        z = z_scratch[...]                                        # [B, ctrl_in+H]

        # ---- single fused LSTM-gate matmul (PyTorch order: i, f, g, o) ------
        gates = (jnp.dot(z, w_g_ref[...], preferred_element_type=jnp.float32)
                 + b_g_ref[...])                                  # [B, 4H]
        sig = jax.nn.sigmoid(gates)          # one EUP pass covers i, f, o
        i_g = sig[:, 0 * H:1 * H]
        f_g = sig[:, 1 * H:2 * H]
        o_g = sig[:, 3 * H:4 * H]
        g_g = jnp.tanh(gates[:, 2 * H:3 * H])

        c_new = f_g * c_ref[...] + i_g * g_g
        h_new = o_g * jnp.tanh(c_new)

        # ---- fused output_gen + param_gen (zero-padded, lane-dense) ---------
        op = (jnp.dot(h_new, w_op_ref[...], preferred_element_type=jnp.float32)
              + b_op_ref[...])                                    # [B, O+P padded]

        # in-kernel per-lane head activations (sigmoid / softplus groups)
        lane = jax.lax.broadcasted_iota(jnp.int32, op.shape, 1)
        op = jnp.where(_ranges_mask(lane, sig_ranges), jax.nn.sigmoid(op),
                       jnp.where(_ranges_mask(lane, sp_ranges),
                                 jax.nn.softplus(op), op))

        # ---- pack everything into ONE lane-dense output slab ----------------
        slab_ref[:, 0:H] = h_new
        slab_ref[:, H:2 * H] = c_new
        slab_ref[:, 2 * H:] = op

    return kernel


# --------------------------------------------------------------------------
# Wrapper
# --------------------------------------------------------------------------
def control_params_forward(inputs, read_data, prev_state, weights, cfg):
    """inputs [B, input_size], read_data [B, read_size], prev_state=(h, c)."""
    h_prev, c_prev = prev_state
    B, n_in = inputs.shape
    n_rd = read_data.shape[1]
    H = cfg['hidden_state_dim']
    O = cfg['output_size']

    word = cfg['memory_content_size']
    nr = cfg['num_reads']
    nw = cfg['num_writes']
    sh = cfg['shift_size']
    num_read_modes = 1 + 2 * nw

    sizes = [nr * word, nr, nw * word, nw, nw * word, nw * word,
             nr, nw, nw, nr * num_read_modes, nr * sh, nw * sh]
    offs = [0]
    for s in sizes:
        offs.append(offs[-1] + s)
    P = offs[-1]

    SLAB = _round_up(2 * H + O + P, 128)

    # chunks activated with sigmoid: erase_vectors, free/allocation/write gates
    sig_idx = (4, 6, 7, 8)
    # chunks activated with softplus: content strengths, shifts, shifts_write
    sp_idx = (1, 3, 10, 11)
    sig_ranges = tuple((O + offs[i], O + offs[i + 1]) for i in sig_idx)
    sp_ranges = tuple((O + offs[i], O + offs[i + 1]) for i in sp_idx)

    kernel = make_control_params_kernel(n_in, n_rd, H, sig_ranges, sp_ranges)

    args = (inputs, read_data, h_prev, c_prev,
            weights['w_gates'], weights['b_gates'],
            weights['w_op'], weights['b_op'])

    def _full_spec(shape):
        return pl.BlockSpec(shape, lambda i: tuple(0 for _ in shape))

    slab = pl.pallas_call(
        kernel,
        out_shape=jax.ShapeDtypeStruct((B, SLAB), jnp.float32),
        grid=(1,),
        in_specs=[_full_spec(a.shape) for a in args],
        out_specs=_full_spec((B, SLAB)),
        scratch_shapes=[pltpu.VMEM((B, n_in + n_rd + H), jnp.float32)],
        compiler_params=pltpu.CompilerParams(dimension_semantics=("arbitrary",)),
    )(*args)

    # ---------------- slice the packed slab (cheap views in the wrapper) ----
    h_new = slab[:, 0:H]
    c_new = slab[:, H:2 * H]
    output = slab[:, 2 * H:2 * H + O]
    par = slab[:, 2 * H + O:2 * H + O + P]

    ch = [par[:, offs[k]:offs[k + 1]] for k in range(len(sizes))]

    # sigmoid / softplus were already applied in-kernel; only group softmaxes here.
    update_data = {
        'read_content_keys': ch[0].reshape(B, nr, word),
        'read_content_strengths': ch[1],
        'write_content_keys': ch[2].reshape(B, nw, word),
        'write_content_strengths': ch[3],
        'erase_vectors': ch[4].reshape(B, nw, word),
        'write_vectors': ch[5].reshape(B, nw, word),
        'free_gate': ch[6].reshape(B, nr, 1),
        'allocation_gate': ch[7].reshape(B, nw, 1),
        'write_gate': ch[8].reshape(B, nw, 1),
        'read_mode': jax.nn.softmax(
            ch[9].reshape(B, nr, num_read_modes), axis=-1),
        'shifts': jax.nn.softmax(ch[10].reshape(B, nr, sh), axis=-1),
        'shifts_write': jax.nn.softmax(ch[11].reshape(B, nw, sh), axis=-1),
    }
    return output, (h_new, c_new), update_data


# --------------------------------------------------------------------------
# Deterministic parameter init (PyTorch-style uniform(-1/sqrt(fan_in), +)),
# stored in the fused / transposed layouts the kernel expects.
# --------------------------------------------------------------------------
def init_weights(key, n_in, n_rd, H, O, P, out_width):
    ctrl_in = n_in + n_rd
    ks = jax.random.split(key, 8)

    def u(k, shape, fan_in):
        bound = 1.0 / math.sqrt(fan_in)
        return jax.random.uniform(k, shape, jnp.float32, -bound, bound)

    # nn.LSTMCell: every param ~ U(-1/sqrt(H), 1/sqrt(H)); weights stored transposed
    # and stacked [w_ih ; w_hh] so the kernel does a single fused matmul.
    w_ih = u(ks[0], (ctrl_in, 4 * H), H)
    w_hh = u(ks[1], (H, 4 * H), H)
    w_gates = jnp.concatenate([w_ih, w_hh], axis=0)                 # [ctrl_in+H, 4H]
    b_gates = u(ks[2], (1, 4 * H), H) + u(ks[3], (1, 4 * H), H)     # b_ih + b_hh

    # output_gen (Linear H->O) and all param_gen heads (Linear H->P), fused along
    # the output dim and zero-padded to a lane-dense width.
    w_out = u(ks[4], (H, O), H)
    b_out = u(ks[5], (1, O), H)
    w_par = u(ks[6], (H, P), H)
    b_par = u(ks[7], (1, P), H)
    pad = out_width - O - P
    w_op = jnp.concatenate(
        [w_out, w_par, jnp.zeros((H, pad), jnp.float32)], axis=1)   # [H, out_width]
    b_op = jnp.concatenate(
        [b_out, b_par, jnp.zeros((1, pad), jnp.float32)], axis=1)   # [1, out_width]

    return {'w_gates': w_gates, 'b_gates': b_gates, 'w_op': w_op, 'b_op': b_op}


if __name__ == "__main__":
    cfg = {
        'control_bits': 2,
        'data_bits': 8,
        'hidden_state_dim': 32,
        'memory_content_size': 8,
        'controller_type': 'lstm',
        'shift_size': 3,
        'num_reads': 2,
        'num_writes': 1,
        'non_linearity': 'sigmoid',   # consumed by ControllerFactory for non-LSTM cells;
                                      # the reference forward applies no activation to output_gen.
        'output_size': 10,
    }
    B = 2
    input_size = cfg['control_bits'] + cfg['data_bits']            # 10
    read_size = cfg['num_reads'] * cfg['memory_content_size']      # 16
    H = cfg['hidden_state_dim']
    O = cfg['output_size']
    word, nr, nw, sh = (cfg['memory_content_size'], cfg['num_reads'],
                        cfg['num_writes'], cfg['shift_size'])
    num_read_modes = 1 + 2 * nw
    P_total = (nr * word + nr + nw * word + nw + nw * word + nw * word
               + nr + nw + nw + nr * num_read_modes + nr * sh + nw * sh)
    SLAB = _round_up(2 * H + O + P_total, 128)

    key = jax.random.PRNGKey(0)
    k_w, k_x, k_r = jax.random.split(key, 3)
    weights = init_weights(k_w, input_size, read_size, H, O, P_total, SLAB - 2 * H)

    inputs = jax.random.normal(k_x, (B, input_size), jnp.float32)
    read_data = jax.random.normal(k_r, (B, read_size), jnp.float32)
    # init_state: zero LSTM state tuple
    prev_state = (jnp.zeros((B, H), jnp.float32), jnp.zeros((B, H), jnp.float32))

    output, state, update_data = control_params_forward(
        inputs, read_data, prev_state, weights, cfg)

    jax.block_until_ready(output)
    jax.block_until_ready(state)
    jax.block_until_ready(update_data)
    print("KERNEL_OK")
</pallas_src>

<mosaic_0001>
module attributes {stable_mosaic.version = 11 : i64} {
  func.func @kernel(%arg0: i32, %arg1: memref<2x10xf32, #tpu.memory_space<vmem>>, %arg2: memref<2x16xf32, #tpu.memory_space<vmem>>, %arg3: memref<2x32xf32, #tpu.memory_space<vmem>>, %arg4: memref<2x32xf32, #tpu.memory_space<vmem>>, %arg5: memref<58x128xf32, #tpu.memory_space<vmem>>, %arg6: memref<1x128xf32, #tpu.memory_space<vmem>>, %arg7: memref<32x192xf32, #tpu.memory_space<vmem>>, %arg8: memref<1x192xf32, #tpu.memory_space<vmem>>, %arg9: memref<2x256xf32, #tpu.memory_space<vmem>>, %arg10: memref<2x58xf32, #tpu.memory_space<vmem>>) attributes {dimension_semantics = [#tpu.dimension_semantics<arbitrary>], iteration_bounds = array<i64: 1>, scalar_prefetch = 0 : i64, scratch_operands = 1 : i64, tpu.core_type = #tpu.core_type<tc>, window_params = [{pipeline_mode = #tpu.pipeline_mode<synchronous>, transform_indices = @transform_0, window_bounds = array<i64: 2, 10>}, {pipeline_mode = #tpu.pipeline_mode<synchronous>, transform_indices = @transform_1, window_bounds = array<i64: 2, 16>}, {pipeline_mode = #tpu.pipeline_mode<synchronous>, transform_indices = @transform_2, window_bounds = array<i64: 2, 32>}, {pipeline_mode = #tpu.pipeline_mode<synchronous>, transform_indices = @transform_3, window_bounds = array<i64: 2, 32>}, {pipeline_mode = #tpu.pipeline_mode<synchronous>, transform_indices = @transform_4, window_bounds = array<i64: 58, 128>}, {pipeline_mode = #tpu.pipeline_mode<synchronous>, transform_indices = @transform_5, window_bounds = array<i64: 1, 128>}, {pipeline_mode = #tpu.pipeline_mode<synchronous>, transform_indices = @transform_6, window_bounds = array<i64: 32, 192>}, {pipeline_mode = #tpu.pipeline_mode<synchronous>, transform_indices = @transform_7, window_bounds = array<i64: 1, 192>}, {pipeline_mode = #tpu.pipeline_mode<synchronous>, transform_indices = @transform_8, window_bounds = array<i64: 2, 256>}]} {
    %c0 = arith.constant 0 : index
    %c0_0 = arith.constant 0 : index
    %0 = vector.load %arg1[%c0, %c0_0] : memref<2x10xf32, #tpu.memory_space<vmem>>, vector<2x10xf32>
    %c0_1 = arith.constant 0 : index
    %c0_2 = arith.constant 0 : index
    %1 = vector.load %arg10[%c0_1, %c0_2] : memref<2x58xf32, #tpu.memory_space<vmem>>, vector<2x10xf32>
    tpu.vector_store %arg10[%c0_1, %c0_2], %0 {strides = array<i32>} : memref<2x58xf32, #tpu.memory_space<vmem>>, vector<2x10xf32>,
    %c0_3 = arith.constant 0 : index
    %c0_4 = arith.constant 0 : index
    %2 = vector.load %arg2[%c0_3, %c0_4] : memref<2x16xf32, #tpu.memory_space<vmem>>, vector<2x16xf32>
    %c0_5 = arith.constant 0 : index
    %c10 = arith.constant 10 : index
    %3 = vector.load %arg10[%c0_5, %c10] : memref<2x58xf32, #tpu.memory_space<vmem>>, vector<2x16xf32>
    tpu.vector_store %arg10[%c0_5, %c10], %2 {strides = array<i32>} : memref<2x58xf32, #tpu.memory_space<vmem>>, vector<2x16xf32>,
    %c0_6 = arith.constant 0 : index
    %c0_7 = arith.constant 0 : index
    %4 = vector.load %arg3[%c0_6, %c0_7] : memref<2x32xf32, #tpu.memory_space<vmem>>, vector<2x32xf32>
    %c0_8 = arith.constant 0 : index
    %c26 = arith.constant 26 : index
    %5 = vector.load %arg10[%c0_8, %c26] : memref<2x58xf32, #tpu.memory_space<vmem>>, vector<2x32xf32>
    tpu.vector_store %arg10[%c0_8, %c26], %4 {strides = array<i32>} : memref<2x58xf32, #tpu.memory_space<vmem>>, vector<2x32xf32>,
    %c0_9 = arith.constant 0 : index
    %c0_10 = arith.constant 0 : index
    %6 = vector.load %arg10[%c0_9, %c0_10] : memref<2x58xf32, #tpu.memory_space<vmem>>, vector<2x58xf32>
    %c0_11 = arith.constant 0 : index
    %c0_12 = arith.constant 0 : index
    %7 = vector.load %arg5[%c0_11, %c0_12] : memref<58x128xf32, #tpu.memory_space<vmem>>, vector<58x128xf32>
    %cst = arith.constant dense<0.000000e+00> : vector<2x128xf32>
    %8 = tpu.matmul %6, %7, %cst {dimension_numbers = #tpu.dot_dimension_numbers<[1], [0], [0], [1], [0, 0, 1, 1], [], []>} : vector<2x58xf32>, vector<58x128xf32>, vector<2x128xf32> -> vector<2x128xf32>
    %c0_13 = arith.constant 0 : index
    %c0_14 = arith.constant 0 : index
    %9 = vector.load %arg6[%c0_13, %c0_14] : memref<1x128xf32, #tpu.memory_space<vmem>>, vector<1x128xf32>
    %10 = vector.broadcast %9 : vector<1x128xf32> to vector<2x128xf32>
    %11 = arith.addf %8, %10 : vector<2x128xf32>
    %12 = arith.negf %11 : vector<2x128xf32>
    %13 = math.exp %12 : vector<2x128xf32>
    %cst_15 = arith.constant 1.000000e+00 : f32
    %14 = vector.broadcast %cst_15 : f32 to vector<2x128xf32>
    %15 = arith.addf %14, %13 : vector<2x128xf32>
    %16 = arith.divf %14, %15 : vector<2x128xf32>
    %17 = vector.extract_strided_slice %16 {offsets = [0, 0], sizes = [2, 32], strides = [1, 1]} : vector<2x128xf32> to vector<2x32xf32>
    %18 = vector.extract_strided_slice %16 {offsets = [0, 32], sizes = [2, 32], strides = [1, 1]} : vector<2x128xf32> to vector<2x32xf32>
    %19 = vector.extract_strided_slice %16 {offsets = [0, 96], sizes = [2, 32], strides = [1, 1]} : vector<2x128xf32> to vector<2x32xf32>
    %20 = vector.extract_strided_slice %11 {offsets = [0, 64], sizes = [2, 32], strides = [1, 1]} : vector<2x128xf32> to vector<2x32xf32>
    %21 = math.tanh %20 : vector<2x32xf32>
    %c0_16 = arith.constant 0 : index
    %c0_17 = arith.constant 0 : index
    %22 = vector.load %arg4[%c0_16, %c0_17] : memref<2x32xf32, #tpu.memory_space<vmem>>, vector<2x32xf32>
    %23 = arith.mulf %18, %22 : vector<2x32xf32>
    %24 = arith.mulf %17, %21 : vector<2x32xf32>
    %25 = arith.addf %23, %24 : vector<2x32xf32>
    %26 = math.tanh %25 : vector<2x32xf32>
    %27 = arith.mulf %19, %26 : vector<2x32xf32>
    %c0_18 = arith.constant 0 : index
    %c0_19 = arith.constant 0 : index
    %28 = vector.load %arg7[%c0_18, %c0_19] : memref<32x192xf32, #tpu.memory_space<vmem>>, vector<32x192xf32>
    %cst_20 = arith.constant dense<0.000000e+00> : vector<2x192xf32>
    %29 = tpu.matmul %27, %28, %cst_20 {dimension_numbers = #tpu.dot_dimension_numbers<[1], [0], [0], [1], [0, 0, 1, 1], [], []>} : vector<2x32xf32>, vector<32x192xf32>, vector<2x192xf32> -> vector<2x192xf32>
    %c0_21 = arith.constant 0 : index
    %c0_22 = arith.constant 0 : index
    %30 = vector.load %arg8[%c0_21, %c0_22] : memref<1x192xf32, #tpu.memory_space<vmem>>, vector<1x192xf32>
    %31 = vector.broadcast %30 : vector<1x192xf32> to vector<2x192xf32>
    %32 = arith.addf %29, %31 : vector<2x192xf32>
    %33 = tpu.iota {dimensions = array<i32: 1>} : vector<2x192xi32>
    %c37_i32 = arith.constant 37 : i32
    %34 = vector.broadcast %c37_i32 : i32 to vector<2x192xi32>
    %35 = arith.cmpi sge, %33, %34 : vector<2x192xi32>
    %c45_i32 = arith.constant 45 : i32
    %36 = vector.broadcast %c45_i32 : i32 to vector<2x192xi32>
    %37 = arith.cmpi slt, %33, %36 : vector<2x192xi32>
    %38 = arith.andi %35, %37 : vector<2x192xi1>
    %c53_i32 = arith.constant 53 : i32
    %39 = vector.broadcast %c53_i32 : i32 to vector<2x192xi32>
    %40 = arith.cmpi sge, %33, %39 : vector<2x192xi32>
    %c55_i32 = arith.constant 55 : i32
    %41 = vector.broadcast %c55_i32 : i32 to vector<2x192xi32>
    %42 = arith.cmpi slt, %33, %41 : vector<2x192xi32>
    %43 = arith.andi %40, %42 : vector<2x192xi1>
    %44 = arith.ori %38, %43 : vector<2x192xi1>
    %c55_i32_23 = arith.constant 55 : i32
    %45 = vector.broadcast %c55_i32_23 : i32 to vector<2x192xi32>
    %46 = arith.cmpi sge, %33, %45 : vector<2x192xi32>
    %c56_i32 = arith.constant 56 : i32
    %47 = vector.broadcast %c56_i32 : i32 to vector<2x192xi32>
    %48 = arith.cmpi slt, %33, %47 : vector<2x192xi32>
    %49 = arith.andi %46, %48 : vector<2x192xi1>
    %50 = arith.ori %44, %49 : vector<2x192xi1>
    %c56_i32_24 = arith.constant 56 : i32
    %51 = vector.broadcast %c56_i32_24 : i32 to vector<2x192xi32>
    %52 = arith.cmpi sge, %33, %51 : vector<2x192xi32>
    %c57_i32 = arith.constant 57 : i32
    %53 = vector.broadcast %c57_i32 : i32 to vector<2x192xi32>
    %54 = arith.cmpi slt, %33, %53 : vector<2x192xi32>
    %55 = arith.andi %52, %54 : vector<2x192xi1>
    %56 = arith.ori %50, %55 : vector<2x192xi1>
    %57 = arith.negf %32 : vector<2x192xf32>
    %58 = math.exp %57 : vector<2x192xf32>
    %cst_25 = arith.constant 1.000000e+00 : f32
    %59 = vector.broadcast %cst_25 : f32 to vector<2x192xf32>
    %60 = arith.addf %59, %58 : vector<2x192xf32>
    %61 = arith.divf %59, %60 : vector<2x192xf32>
    %c26_i32 = arith.constant 26 : i32
    %62 = vector.broadcast %c26_i32 : i32 to vector<2x192xi32>
    %63 = arith.cmpi sge, %33, %62 : vector<2x192xi32>
    %c28_i32 = arith.constant 28 : i32
    %64 = vector.broadcast %c28_i32 : i32 to vector<2x192xi32>
    %65 = arith.cmpi slt, %33, %64 : vector<2x192xi32>
    %66 = arith.andi %63, %65 : vector<2x192xi1>
    %c36_i32 = arith.constant 36 : i32
    %67 = vector.broadcast %c36_i32 : i32 to vector<2x192xi32>
    %68 = arith.cmpi sge, %33, %67 : vector<2x192xi32>
    %c37_i32_26 = arith.constant 37 : i32
    %69 = vector.broadcast %c37_i32_26 : i32 to vector<2x192xi32>
    %70 = arith.cmpi slt, %33, %69 : vector<2x192xi32>
    %71 = arith.andi %68, %70 : vector<2x192xi1>
    %72 = arith.ori %66, %71 : vector<2x192xi1>
    %c63_i32 = arith.constant 63 : i32
    %73 = vector.broadcast %c63_i32 : i32 to vector<2x192xi32>
    %74 = arith.cmpi sge, %33, %73 : vector<2x192xi32>
    %c69_i32 = arith.constant 69 : i32
    %75 = vector.broadcast %c69_i32 : i32 to vector<2x192xi32>
    %76 = arith.cmpi slt, %33, %75 : vector<2x192xi32>
    %77 = arith.andi %74, %76 : vector<2x192xi1>
    %78 = arith.ori %72, %77 : vector<2x192xi1>
    %c69_i32_27 = arith.constant 69 : i32
    %79 = vector.broadcast %c69_i32_27 : i32 to vector<2x192xi32>
    %80 = arith.cmpi sge, %33, %79 : vector<2x192xi32>
    %c72_i32 = arith.constant 72 : i32
    %81 = vector.broadcast %c72_i32 : i32 to vector<2x192xi32>
    %82 = arith.cmpi slt, %33, %81 : vector<2x192xi32>
    %83 = arith.andi %80, %82 : vector<2x192xi1>
    %84 = arith.ori %78, %83 : vector<2x192xi1>
    %cst_28 = arith.constant 0.000000e+00 : f32
    %85 = vector.broadcast %cst_28 : f32 to vector<2x192xf32>
    %86 = arith.maximumf %32, %85 : vector<2x192xf32>
    %87 = vector.broadcast %cst_28 : f32 to vector<2x192xf32>
    %88 = arith.subf %32, %87 : vector<2x192xf32>
    %89 = arith.cmpf one, %88, %88 : vector<2x192xf32>
    %90 = vector.broadcast %cst_28 : f32 to vector<2x192xf32>
    %91 = arith.addf %32, %90 : vector<2x192xf32>
    %92 = math.absf %88 : vector<2x192xf32>
    %cst_29 = arith.constant 0.000000e+00 : f32
    %93 = vector.broadcast %cst_29 : f32 to vector<2x192xf32>
    %94 = arith.subf %93, %92 : vector<2x192xf32>
    %95 = math.exp %94 : vector<2x192xf32>
    %96 = math.log1p %95 : vector<2x192xf32>
    %97 = arith.addf %86, %96 : vector<2x192xf32>
    %98 = arith.select %89, %91, %97 : vector<2x192xi1>, vector<2x192xf32>
    %99 = arith.select %84, %98, %32 : vector<2x192xi1>, vector<2x192xf32>
    %100 = arith.select %56, %61, %99 : vector<2x192xi1>, vector<2x192xf32>
    %c0_30 = arith.constant 0 : index
    %c0_31 = arith.constant 0 : index
    %101 = vector.load %arg9[%c0_30, %c0_31] : memref<2x256xf32, #tpu.memory_space<vmem>>, vector<2x32xf32>
    tpu.vector_store %arg9[%c0_30, %c0_31], %27 {strides = array<i32>} : memref<2x256xf32, #tpu.memory_space<vmem>>, vector<2x32xf32>,
    %c0_32 = arith.constant 0 : index
    %c32 = arith.constant 32 : index
    %102 = vector.load %arg9[%c0_32, %c32] : memref<2x256xf32, #tpu.memory_space<vmem>>, vector<2x32xf32>
    tpu.vector_store %arg9[%c0_32, %c32], %25 {strides = array<i32>} : memref<2x256xf32, #tpu.memory_space<vmem>>, vector<2x32xf32>,
    %c0_33 = arith.constant 0 : index
    %c64 = arith.constant 64 : index
    %103 = vector.load %arg9[%c0_33, %c64] : memref<2x256xf32, #tpu.memory_space<vmem>>, vector<2x192xf32>
    tpu.vector_store %arg9[%c0_33, %c64], %100 {strides = array<i32>} : memref<2x256xf32, #tpu.memory_space<vmem>>, vector<2x192xf32>,
    return
  }
  func.func @transform_0(%arg0: i32) -> (i32, i32) {
    %c0_i32 = arith.constant 0 : i32
    %c0_i32_0 = arith.constant 0 : i32
    %c0_i32_1 = arith.constant 0 : i32
    return %c0_i32, %c0_i32_0 : i32, i32
  }
  func.func @transform_1(%arg0: i32) -> (i32, i32) {
    %c0_i32 = arith.constant 0 : i32
    %c0_i32_0 = arith.constant 0 : i32
    %c0_i32_1 = arith.constant 0 : i32
    return %c0_i32, %c0_i32_0 : i32, i32
  }
  func.func @transform_2(%arg0: i32) -> (i32, i32) {
    %c0_i32 = arith.constant 0 : i32
    %c0_i32_0 = arith.constant 0 : i32
    %c0_i32_1 = arith.constant 0 : i32
    return %c0_i32, %c0_i32_0 : i32, i32
  }
  func.func @transform_3(%arg0: i32) -> (i32, i32) {
    %c0_i32 = arith.constant 0 : i32
    %c0_i32_0 = arith.constant 0 : i32
    %c0_i32_1 = arith.constant 0 : i32
    return %c0_i32, %c0_i32_0 : i32, i32
  }
  func.func @transform_4(%arg0: i32) -> (i32, i32) {
    %c0_i32 = arith.constant 0 : i32
    %c0_i32_0 = arith.constant 0 : i32
    %c0_i32_1 = arith.constant 0 : i32
    return %c0_i32, %c0_i32_0 : i32, i32
  }
  func.func @transform_5(%arg0: i32) -> (i32, i32) {
    %c0_i32 = arith.constant 0 : i32
    %c0_i32_0 = arith.constant 0 : i32
    %c0_i32_1 = arith.constant 0 : i32
    return %c0_i32, %c0_i32_0 : i32, i32
  }
  func.func @transform_6(%arg0: i32) -> (i32, i32) {
    %c0_i32 = arith.constant 0 : i32
    %c0_i32_0 = arith.constant 0 : i32
    %c0_i32_1 = arith.constant 0 : i32
    return %c0_i32, %c0_i32_0 : i32, i32
  }
  func.func @transform_7(%arg0: i32) -> (i32, i32) {
    %c0_i32 = arith.constant 0 : i32
    %c0_i32_0 = arith.constant 0 : i32
    %c0_i32_1 = arith.constant 0 : i32
    return %c0_i32, %c0_i32_0 : i32, i32
  }
  func.func @transform_8(%arg0: i32) -> (i32, i32) {
    %c0_i32 = arith.constant 0 : i32
    %c0_i32_0 = arith.constant 0 : i32
    %c0_i32_1 = arith.constant 0 : i32
    return %c0_i32, %c0_i32_0 : i32, i32
  }
}

</mosaic_0001>

<bundles_post_ra>
// kernel: tpu_custom_call.1
= control target key start
LH: loop header
LB: loop body
LE: loop exit
PB: predicated region body
PF: predicated region fallthrough
CT: control target
= control target key end

     0   :  { %13 = vsyncpa [#allocation4], 0  ;;  %s834_s0 = inlined_call_operand.hbm [shape: f32[2,10], index: 0, kind: input, shape index: {}]   ;;  %s835_s1 = inlined_call_operand.hbm [shape: f32[2,16], index: 1, kind: input, shape index: {}]   ;;  %s836_s2 = inlined_call_operand.hbm [shape: f32[2,32], index: 2, kind: input, shape index: {}]   ;;  %s837_s3 = inlined_call_operand.vmem [shape: f32[2,32], index: 3, kind: input, shape index: {}]   ;;  %s838_s4 = inlined_call_operand.hbm [shape: f32[58,128], index: 4, kind: input, shape index: {}]   ;;  %s839_s5 = inlined_call_operand.hbm [shape: f32[1,128], index: 5, kind: input, shape index: {}]   ;;  %s840_s6 = inlined_call_operand.hbm [shape: f32[32,192], index: 6, kind: input, shape index: {}]   ;;  %s841_s7 = inlined_call_operand.vmem [shape: f32[1,192], index: 7, kind: input, shape index: {}]   ;;  %s842_s8 = inlined_call_operand.hbm [shape: f32[2,256], index: 8, kind: output, shape index: {}]  }
   0x1   :  { %14 = vsyncpa [#allocation7], 0 }
   0x2   :  { %15 = vsyncpa [#allocation10], 0 }
   0x3   :  { %16 = vsyncpa [#allocation13], 0  ;;  %s34_s29 = sshll.u32 %s835_s1, 4  ;;  %s35_s29 = int_to_ptr.hbm [resolvable:$true] %s34_s29 }
   0x4   :  { %17 = vsyncpa [#allocation5], 0  ;;  %s673_s30 = smov [#allocation6]   ;;  %s57_s12 = sshll.u32 %s838_s4, 4  ;;  %s58_s12 = int_to_ptr.hbm [resolvable:$true] %s57_s12 }
   0x5   :  { %s36_s9 = sshll.u32 %s673_s30, 4  ;;  %s674_s13 = smov [#allocation9]   ;;  %s37_s9 = int_to_ptr.vmem [resolvable:$true] %s36_s9 }
   0x6   :  { %39 = dma.hbm_to_vmem [thread:$0]  %s35_s29, 32, %s37_s9, [#allocation7]  }
   0x7   :  { %s59_s14 = sshll.u32 %s674_s13, 4  ;;  %s675_s15 = smov 128   ;;  %s60_s14 = int_to_ptr.vmem [resolvable:$true] %s59_s14 }
   0x8   :  { %s676_s16 = smov 8   ;;  %s23_s1 = sshll.u32 %s834_s0, 4  ;;  %s24_s1 = int_to_ptr.hbm [resolvable:$true] %s23_s1 }
   0x9   :  { %65 = dma.hbm_to_vmem [thread:$0]  %s58_s12, 1024, %s60_s14, [#allocation10], %s675_s15, %s675_s15, %s676_s16  }
   0xa   :  { %s677_s19 = smov [#allocation3]   ;;  %s45_s4 = sshll.u32 %s836_s2, 4  ;;  %s46_s4 = int_to_ptr.hbm [resolvable:$true] %s45_s4 }
   0xb   :  { %s25_s20 = sshll.u32 %s677_s19, 4  ;;  %s678_s23 = smov [#allocation8]   ;;  %s26_s20 = int_to_ptr.vmem [resolvable:$true] %s25_s20 }
   0xc   :  { %28 = dma.hbm_to_vmem [thread:$0]  %s24_s1, 32, %s26_s20, [#allocation4]  }
   0xd   :  { %s47_s24 = sshll.u32 %s678_s23, 4  ;;  %s71_s27 = sshll.u32 %s839_s5, 4  ;;  %s48_s24 = int_to_ptr.vmem [resolvable:$true] %s47_s24  ;;  %s72_s27 = int_to_ptr.hbm [resolvable:$true] %s71_s27 }
   0xe   :  { %50 = dma.hbm_to_vmem [thread:$0]  %s46_s4, 32, %s48_s24, [#allocation7]  }
   0xf   :  { %s81_s29 = sshll.u32 %s840_s6, 4  ;;  %s679_s30 = smov [#allocation11]   ;;  %s82_s29 = int_to_ptr.hbm [resolvable:$true] %s81_s29 }
  0x10   :  { %s73_s9 = sshll.u32 %s679_s30, 4  ;;  %s680_s2 = smov [#allocation12]   ;;  %s74_s9 = int_to_ptr.vmem [resolvable:$true] %s73_s9 }
  0x11   :  { %76 = dma.hbm_to_vmem [thread:$0]  %s72_s27, 16, %s74_s9, [#allocation10]  }
  0x12   :  { %s83_s10 = sshll.u32 %s680_s2, 4  ;;  %s681_s11 = smov 256   ;;  %s84_s10 = int_to_ptr.vmem [resolvable:$true] %s83_s10 }
  0x13   :  { %s682_s12 = smov 16  }
  0x14   :  { %89 = dma.hbm_to_vmem [thread:$0]  %s82_s29, 1024, %s84_s10, [#allocation13], %s681_s11, %s681_s11, %s682_s12  }
  0x15   :  { %663 = dma.done.wait [#allocation4], 32  }
  0x16   :  { %664 = vsyncadd [#allocation4], 4294967264 }
  0x17   :  { %665 = dma.done.wait [#allocation7], 64  }
  0x18   :  { %666 = vsyncadd [#allocation7], 4294967232 }
  0x19   :  { %667 = dma.done.wait [#allocation10], 1040  }
  0x1a   :  { %668 = vsyncadd [#allocation10], 4294966256 }
  0x1b   :  { %669 = dma.done.wait [#allocation13], 1024  }
  0x1c   :  { %670 = vsyncadd [#allocation13], 4294966272  ;;  %v119_v0 = vld [vmem:[#allocation6] sm:$0x3]  ;;  %s683_s5 = smov 10   ;;  %s684_s6 = smov 26   ;;  %v276_v56 = vlaneseq }
  0x1d   :  { %121 = vrot.lane.b32.xlu0 %v119_v0, %s683_s5  ;;  %v126_v1 = vld [vmem:[#allocation8] sm:$0x3]  ;;  %vm117_vm0 = vcmask 74752   ;;  %v116_v2 = vld [vmem:[#allocation3] sm:$0x3]  ;;  %vm843_vm1 = vcmask 1041408  }
  0x1e   :  { %118 = vst.msk [vmem:[#allocation2] sm:$0x3] %vm117_vm0, %v116_v2  ;;  %v141_v3 = vld [vmem:[#allocation9 + $0x38] sm:$0x3]  ;;  %v140_v4 = vld [vmem:[#allocation9 + $0x30] sm:$0xff]  ;;  %v139_v5 = vld [vmem:[#allocation9 + $0x28] sm:$0xff] }
  0x1f   :  { %456 = vmatpush.msk.msra.mxu0 %vm843_vm1, %v141_v3  ;;  %v138_v6 = vld [vmem:[#allocation9 + $0x20] sm:$0xff]  ;;  %v137_v7 = vld [vmem:[#allocation9 + $0x18] sm:$0xff]  ;;  %v136_v8 = vld [vmem:[#allocation9 + $0x10] sm:$0xff]  ;;  %vm124_vm2 = vcmask 205904   ;;  %vm131_vm3 = vcmask 468176   ;;  %vm146_vm4 = vcmask 474112  }
  0x20   :  { %v135_v9 = vld [vmem:[#allocation9 + $0x8] sm:$0xff]  ;;  %v134_v10 = vld [vmem:[#allocation9] sm:$0xff]  ;;  %s685_s13 = smov 64   ;;  %v194_v18 = vld [vmem:[%s837_s3] sm:$0x3]  ;;  %s686_s16 = smov 32  }
  0x21   :  { %163 = vmatpush.msra.mxu0 %v140_v4  ;;  %v478_v14 = vld [vmem:[#allocation11] ss:$0 sm:$0xff]  ;;  %v222_v39 = vld [vmem:[#allocation12 + $0x30] sm:$0xff]  ;;  %v220_v41 = vld [vmem:[#allocation12 + $0x20] sm:$0xff]  ;;  %vm418_vm9 = vcmask 254976   ;;  %vm233_vm10 = vcmask 261120  }
  0x22   :  { %v223_v40 = vld [vmem:[#allocation12 + $0x38] sm:$0xff]  ;;  %248 = vmatpush.msra.mxu1 %v222_v39  ;;  %v221_v42 = vld [vmem:[#allocation12 + $0x28] sm:$0xff]  ;;  %v218_v43 = vld [vmem:[#allocation12 + $0x10] sm:$0xff]  ;;  %vm420_vm11 = vcmask 517376   ;;  %v277_v59 = vand.u32 127, %v276_v56  ;;  %s443_s20 = sshll.u32 %s842_s8, 4  ;;  %s444_s20 = int_to_ptr.hbm [resolvable:$true] %s443_s20 }
  0x23   :  { %164 = vmatpush.msra.mxu0 %v139_v5  ;;  %268 = vmatpush.msra.mxu2 %v223_v40  ;;  %v219_v44 = vld [vmem:[#allocation12 + $0x18] sm:$0xff]  ;;  %v216_v45 = vld [vmem:[#allocation12] sm:$0xff]  ;;  %v217_v46 = vld [vmem:[#allocation12 + $0x8] sm:$0xff] }
  0x24   :  { %249 = vmatpush.msra.mxu1 %v220_v41  ;;  %v763_v50 = vld [vmem:[%s841_s7] sm:$0x3]  ;;  %vm347_vm12 = vcmp.ge.s32.totalorder %v277_v59, 26  ;;  %vm349_vm13 = vcmp.lt.s32.totalorder %v277_v59, 28  ;;  %vm353_vm14 = vcmp.ge.s32.totalorder %v277_v59, 36  ;;  %vm355_vm15 = vcmp.lt.s32.totalorder %v277_v59, 37 }
  0x25   :  { %128 = vrot.lane.b32.xlu0 %v126_v1, %s684_s6  ;;  %165 = vmatpush.msra.mxu0 %v138_v6  ;;  %v226_v51 = vperm.slane %v763_v50, 0  ;;  %vm279_vm0 = vcmp.ge.s32.totalorder %v277_v59, 37  ;;  %vm303_vm1 = vcmp.lt.s32.totalorder %v277_v59, 57  ;;  %s687_s7 = smov [#allocation14]  }
  0x26   :  { %269 = vmatpush.msra.mxu2 %v221_v42  ;;  %250 = vmatpush.msra.mxu1 %v218_v43  ;;  %s441_s18 = sshll.u32 %s687_s7, 4  ;;  %s442_s18 = int_to_ptr.vmem [resolvable:$true] %s441_s18 }
  0x27   :  { %166 = vmatpush.msra.mxu0 %v137_v7 }
  0x28   :  { %270 = vmatpush.msra.mxu2 %v219_v44  ;;  %251 = vmatpush.msra.mxu1 %v216_v45 }
  0x29   :  { %167 = vmatpush.msra.mxu0 %v136_v8 }
  0x2a   :  { %271 = vmatpush.msra.mxu2 %v217_v46 }
  0x2b   :  { %168 = vmatpush.msra.mxu0 %v135_v9  ;;  %v227_v9 = vperm.slane %v763_v50, 1 }
  0x2d   :  { %169 = vmatpush.msra.mxu0 %v134_v10 }
  0x8f   :  { %v122_v11 = vpop.permute.xlu0 %121 }
  0x90   :  { %125 = vst.msk [vmem:[#allocation2] sm:$0x3] %vm124_vm2, %v122_v11  ;;  %vm281_vm2 = vcmp.lt.s32.totalorder %v277_v59, 45 }
  0x97   :  { %v129_v12 = vpop.permute.xlu0 %128 }
  0x98   :  { %132 = vst.msk [vmem:[#allocation2] sm:$0x3] %vm131_vm3, %v129_v12  ;;  %vm285_vm3 = vcmp.ge.s32.totalorder %v277_v59, 53 }
  0x9f   :  { %v133_v13 = vld [vmem:[#allocation2] sm:$0x3] }
  0xa0   :  { %457 = vmatmul.msk.f32.vlgmr.msra.gmra.mxu0 %vm146_vm4, %v133_v13  ;;  %vm287_vm4 = vcmp.lt.s32.totalorder %v277_v59, 55 }
 0x11d   :  { %v171_v15 = vpop.f32.mrf.mxu0 }
 0x11e   :  { %v172_v16 = vadd.f32 %v478_v14, %v171_v15 }
 0x120   :  { %479 = vtanh.f32 %v172_v16  ;;  %v458_v19 = vmul.f32 -1.442695, %v172_v16 }
 0x122   :  { %481 = vpow2.f32 %v458_v19 }
 0x126   :  { %v480_v17 = vpop.eup %479 }
 0x127   :  { %201 = vrot.lane.b32.xlu1 %v480_v17, %s685_s13 }
 0x128   :  { %v482_v20 = vpop.eup %481 }
 0x129   :  { %v177_v21 = vadd.f32 1.0, %v482_v20 }
 0x12b   :  { %483 = vrcp.f32 %v177_v21  ;;  %v189_v27 = vand.u32 2147483648, %v177_v21  ;;  %vm183_vm6 = vweird.f32 %v177_v21  ;;  %v187_v28 = vand.u32 2147483647, %v177_v21 }
 0x12d   :  { %v190_v30 = vor.u32 1.1754944e-38, %v189_v27  ;;  %vm188_vm8 = vcmp.eq.f32.partialorder %v187_v28, 8.507059e+37 }
 0x12f   :  { %196 = vrot.lane.b32.xlu1 %v194_v18, %s686_s16 }
 0x131   :  { %v484_v22 = vpop.eup %483 }
 0x132   :  { %v179_v23 = vmul.f32 %v484_v22, %v177_v21  ;;  %vm184_vm5 = vweird.f32 %v484_v22 }
 0x133   :  { %vm185_vm7 = vmor %vm183_vm6, %vm184_vm5 }
 0x134   :  { %v180_v24 = vsub.f32 1.0, %v179_v23  ;;  %vm770_vm5 = vmand %vm347_vm12, %vm349_vm13  ;;  %vm295_vm12 = vcmp.lt.s32.totalorder %v277_v59, 56 }
 0x135   :  { %vm774_vm6 = vmand %vm353_vm14, %vm355_vm15 }
 0x136   :  { %v181_v25 = vmul.f32 %v484_v22, %v180_v24  ;;  %vm359_vm13 = vmor %vm770_vm5, %vm774_vm6 }
 0x138   :  { %v182_v26 = vadd.f32 %v484_v22, %v181_v25 }
 0x13a   :  { %v186_v29 = vsel %vm185_vm7, %v484_v22, %v182_v26  ;;  %vm778_vm7 = vmand %vm279_vm0, %vm281_vm2  ;;  %vm369_vm0 = vcmp.ge.s32.totalorder %v277_v59, 69  ;;  %vm371_vm2 = vcmp.lt.s32.totalorder %v277_v59, 72 }
 0x13b   :  { %v191_v32 = vsel %vm188_vm8, %v190_v30, %v186_v29  ;;  %vm361_vm8 = vcmp.ge.s32.totalorder %v277_v59, 63  ;;  %vm799_vm6 = vmand %vm369_vm0, %vm371_vm2  ;;  %vm860_vm0 = vcmask 1041408   ;;  %vm432_vm2 = vcmask 1041920  }
 0x199   :  { %v202_v31 = vpop.permute.xlu1 %201 }
 0x19a   :  { %v204_v33 = vmul.f32 %v202_v31, %v191_v32 }
 0x19c   :  { %206 = vrot.lane.b32.xlu2 %v204_v33, %s686_s16 }
 0x1a1   :  { %v197_v34 = vpop.permute.xlu1 %196 }
 0x1a2   :  { %v199_v35 = vmul.f32 %v197_v34, %v191_v32 }
 0x1f6   :  { %v207_v36 = vpop.permute.xlu2 %206 }
 0x1f7   :  { %v209_v37 = vadd.f32 %v207_v36, %v199_v35 }
 0x1f9   :  { %485 = vtanh.f32 %v209_v37 }
 0x1ff   :  { %v486_v38 = vpop.eup %485 }
 0x200   :  { %212 = vrot.lane.b32.xlu2 %v486_v38, %s685_s13 }
 0x25a   :  { %v213_v47 = vpop.permute.xlu2 %212 }
 0x25b   :  { %v215_v48 = vmul.f32 %v213_v47, %v191_v32 }
 0x25d   :  { %231 = vrot.lane.b32.xlu0 %v215_v48, %s686_s16 }
 0x2cf   :  { %v232_v49 = vpop.permute.xlu0 %231 }
 0x2d0   :  { %419 = vst.msk [vmem:[#allocation14] sm:$0x3] %vm418_vm9, %v232_v49  ;;  %459 = vmatmul.msk.f32.vlgmr.msra.gmra.mxu1 %vm233_vm10, %v232_v49  ;;  %460 = vmatmul.msk.f32.vlgmr.msra.gmra.mxu2 %vm233_vm10, %v232_v49  ;;  %vm363_vm9 = vcmp.lt.s32.totalorder %v277_v59, 69  ;;  %vm782_vm10 = vmand %vm285_vm3, %vm287_vm4  ;;  %vm301_vm4 = vcmp.ge.s32.totalorder %v277_v59, 56 }
 0x2d1   :  { %421 = vst.msk [vmem:[#allocation14] sm:$0x3] %vm420_vm11, %v209_v37  ;;  %vm293_vm11 = vcmp.ge.s32.totalorder %v277_v59, 55  ;;  %vm365_vm14 = vmand %vm361_vm8, %vm363_vm9 }
 0x2d2   :  { %vm291_vm15 = vmor %vm778_vm7, %vm782_vm10 }
 0x2d3   :  { %vm297_vm3 = vmand %vm293_vm11, %vm295_vm12 }
 0x2d4   :  { %vm795_vm5 = vmor %vm359_vm13, %vm365_vm14 }
 0x2d5   :  { %vm808_vm8 = vmor %vm291_vm15, %vm297_vm3  ;;  %vm433_vm3 = vcmask 1043458  }
 0x2d6   :  { %vm812_vm11 = vmand %vm301_vm4, %vm303_vm1  ;;  %vm429_vm4 = vcmask 523264  }
 0x2d7   :  { %vm375_vm7 = vmor %vm795_vm5, %vm799_vm6 }
 0x2d8   :  { %vm307_vm1 = vmor %vm808_vm8, %vm812_vm11 }
 0x2d9   :  { %vm434_vm5 = vmor %vm433_vm3, %vm432_vm2 }
 0x34d   :  { %v253_v52 = vpop.f32.mrf.mxu1 }
 0x34e   :  { %v766_v53 = vadd.f32 %v253_v52, %v226_v51 }
 0x350   :  { %v461_v54 = vmul.f32 -1.442695, %v766_v53  ;;  %v383_v55 = vand.u32 2147483647, %v766_v53  ;;  %v377_v22 = vmax.f32 %v766_v53, 0.0  ;;  %vm379_vm15 = vcmp.ne.f32.partialorder %v766_v53, %v766_v53 }
 0x352   :  { %487 = vpow2.f32 %v461_v54  ;;  %v385_v57 = vsub.f32 0.0, %v383_v55 }
 0x353   :  { %v273_v13 = vpop.f32.mrf.mxu2 }
 0x354   :  { %v387_v58 = vmul.f32 1.442695, %v385_v57  ;;  %v274_v23 = vadd.f32 %v273_v13, %v227_v9 }
 0x356   :  { %489 = vpow2.f32 %v387_v58  ;;  %v424_v31 = vrot.slane %v274_v23, 6 }
 0x358   :  { %v488_v60 = vpop.eup %487 }
 0x359   :  { %v315_v61 = vadd.f32 1.0, %v488_v60 }
 0x35b   :  { %491 = vrcp.f32 %v315_v61  ;;  %v326_v14 = vand.u32 2147483647, %v315_v61  ;;  %v328_v15 = vand.u32 2147483648, %v315_v61  ;;  %vm322_vm13 = vweird.f32 %v315_v61 }
 0x35c   :  { %v490_v62 = vpop.eup %489 }
 0x35d   :  { %v391_v1 = vadd.f32 1.0, %v490_v62  ;;  %v394_v3 = vmul.f32 -0.5, %v490_v62  ;;  %v397_v8 = vand.u32 2147483647, %v490_v62  ;;  %v329_v26 = vor.u32 1.1754944e-38, %v328_v15 }
 0x35e   :  { %vm327_vm14 = vcmp.eq.f32.partialorder %v326_v14, 8.507059e+37 }
 0x35f   :  { %493 = vlog2.f32 %v391_v1  ;;  %v395_v7 = vadd.f32 1.0, %v394_v3  ;;  %vm398_vm12 = vcmp.lt.f32.partialorder %v397_v8, 0.0004427343 }
 0x361   :  { %v492_v5 = vpop.eup %491  ;;  %v396_v20 = vmul.f32 %v490_v62, %v395_v7 }
 0x362   :  { %v318_v6 = vmul.f32 %v492_v5, %v315_v61  ;;  %vm323_vm9 = vweird.f32 %v492_v5 }
 0x363   :  { %vm324_vm10 = vmor %vm322_vm13, %vm323_vm9 }
 0x364   :  { %v319_v10 = vsub.f32 1.0, %v318_v6 }
 0x365   :  { %v494_v12 = vpop.eup %493 }
 0x366   :  { %v320_v18 = vmul.f32 %v492_v5, %v319_v10  ;;  %v393_v19 = vmul.f32 0.6931472, %v494_v12 }
 0x368   :  { %v321_v24 = vadd.f32 %v492_v5, %v320_v18  ;;  %v399_v25 = vsel %vm398_vm12, %v396_v20, %v393_v19 }
 0x369   :  { %v409_v27 = vadd.f32 %v399_v25, %v377_v22 }
 0x36a   :  { %v325_v28 = vsel %vm324_vm10, %v492_v5, %v321_v24 }
 0x36b   :  { %v330_v29 = vsel %vm327_vm14, %v329_v26, %v325_v28  ;;  %v411_v30 = vsel %vm379_vm15, %v766_v53, %v409_v27 }
 0x36c   :  { %v413_v32 = vsel %vm375_vm7, %v411_v30, %v766_v53 }
 0x36d   :  { %v415_v33 = vsel %vm307_vm1, %v330_v29, %v413_v32 }
 0x36e   :  { %v425_v34 = vsel %vm860_vm0, %v415_v33, %v424_v31 }
 0x36f   :  { %426 = vrot.lane.b32.xlu1 %v425_v34, %s685_s13 }
 0x3e1   :  { %v427_v35 = vpop.permute.xlu1 %426 }
 0x3e2   :  { %v428_v36 = vrot.slane %v427_v35, 6 }
 0x3e4   :  { %v430_v37 = vsel %vm429_vm4, %v428_v36, %v427_v35 }
 0x3e5   :  { %435 = vst.msk [vmem:[#allocation14] sm:$0xf] %vm434_vm5, %v430_v37 }
 0x3e6   :  { %446 = dma.vmem_to_hbm [thread:$0]  %s442_s18, 64, %s444_s20, [#allocation5]  }
 0x3e7   :  { %671 = dma.done.wait [#allocation5], 64  }
 0x3e8   :  { %672 = vsyncadd [#allocation5], 4294967232 }
 0x3e9   :  { %451 = vsyncpa [#allocation4], 1 }
 0x3ea   :  { %452 = vsyncpa [#allocation7], 1 }
 0x3eb   :  { %453 = vsyncpa [#allocation10], 1 }
 0x3ec   :  { %454 = vsyncpa [#allocation13], 1 }
 0x3ed   :  { %455 = vsyncpa [#allocation5], 1 }

</bundles_post_ra>
